<compile_context>
chip_gen: v5e
topology: v5e:2x2
jax: 0.10.0
libtpu: 0.0.40
codegen_flags: <defaults>
</compile_context>

<pallas_src>
import jax
import jax.numpy as jnp
from jax.experimental import pallas as pl
from jax.experimental.pallas import tpu as pltpu

_LANES = 128      # TPU vreg lane width
_SUBLANES = 8     # f32 sublane count


def _walkroom_kernel(x_ref, w_ref, b_ref, o_ref):
    # x_ref: (TB, nS)   w_ref: (nS, nA_pad)   b_ref: (1, nA_pad)
    # o_ref: (TB, nA_pad)  -- lane-dense (nA_pad % 128 == 0) -> unmasked stores
    # MXU matmul in the operands' native dtype, f32 accumulate.
    z = jnp.dot(x_ref[...], w_ref[...], preferred_element_type=jnp.float32)
    z = z + b_ref[...].astype(jnp.float32)       # broadcast bias add (VPU, f32)
    o_ref[...] = jax.nn.sigmoid(z)               # EUP exp + VPU, full-lane store


def prepare_walkroom_params(weight, bias):
    """One-time (outside the hot path) parameter prep.

    weight: (nA, nS) in PyTorch nn.Linear layout; bias: (nA,).
    Returns (w_pad, b_pad, nA) with w_pad: (nS, nA_pad), b_pad: (1, nA_pad),
    where nA_pad is nA rounded up to a multiple of 128 (zero-padded columns).
    """
    nA, nS = weight.shape
    nA_pad = ((nA + _LANES - 1) // _LANES) * _LANES
    w_pad = jnp.zeros((nS, nA_pad), weight.dtype).at[:, :nA].set(weight.T)
    b_pad = jnp.zeros((1, nA_pad), bias.dtype).at[0, :nA].set(bias)
    return w_pad, b_pad, nA


def _default_tile_b(B):
    # Prefer >= 2 grid steps (megacore / v7x has 2 TCs) with sublane-aligned tiles.
    for t in (256, 128, 64, 32, 16, 8):
        if B % t == 0 and B // t >= 2:
            return t
    return B


def walkroom_forward(state, w_pad, b_pad, nA, *, tile_b=None):
    """state: (B, nS); w_pad/b_pad/nA from prepare_walkroom_params()."""
    nS, nA_pad = w_pad.shape
    B = state.shape[0]
    assert state.shape[1] == nS

    x = state
    if not jnp.issubdtype(x.dtype, jnp.floating):
        x = x.astype(jnp.float32)                 # state.float() for int states
    if x.dtype != w_pad.dtype:
        x = x.astype(w_pad.dtype)                 # feed MXU the native param dtype

    # Pad the batch to a sublane multiple so any B lowers cleanly.
    B_pad = ((B + _SUBLANES - 1) // _SUBLANES) * _SUBLANES
    if B_pad != B:
        x = jnp.zeros((B_pad, nS), x.dtype).at[:B].set(x)

    if tile_b is None:
        tile_b = _default_tile_b(B_pad)
    assert B_pad % tile_b == 0, "tile_b must divide the (padded) batch"
    assert tile_b % _SUBLANES == 0 or tile_b == B_pad, \
        "tile_b must be a multiple of 8 (or equal the full batch)"

    grid = (B_pad // tile_b,)
    out = pl.pallas_call(
        _walkroom_kernel,
        out_shape=jax.ShapeDtypeStruct((B_pad, nA_pad), jnp.float32),
        grid_spec=pltpu.PrefetchScalarGridSpec(
            num_scalar_prefetch=0,
            grid=grid,
            in_specs=[
                pl.BlockSpec((tile_b, nS), lambda i: (i, 0)),   # state tile
                pl.BlockSpec((nS, nA_pad), lambda i: (0, 0)),   # whole weight
                pl.BlockSpec((1, nA_pad), lambda i: (0, 0)),    # whole bias
            ],
            out_specs=pl.BlockSpec((tile_b, nA_pad), lambda i: (i, 0)),
        ),
        compiler_params=pltpu.CompilerParams(
            dimension_semantics=("parallel",),
            vmem_limit_bytes=32 * 1024 * 1024,   # explicit; leaves headroom on v7x
        ),
    )(x, w_pad, b_pad)

    if B_pad != B or nA_pad != nA:
        out = out[:B, :nA]                       # drop padding rows / columns
    return out


# TODO(synk): at these toy shapes (B=8, nS=32, nA=8) a standalone pallas_call is
# launch/DMA-overhead bound; in production fuse this linear+sigmoid into the
# surrounding kernel or batch many environment states per call.


if __name__ == "__main__":
    B, nS, nA = 8, 32, 8

    key = jax.random.PRNGKey(0)
    k_x, k_w, k_b = jax.random.split(key, 3)

    # Deterministic synthetic parameters (mimicking nn.Linear init scale).
    bound = 1.0 / (nS ** 0.5)
    weight = jax.random.uniform(k_w, (nA, nS), jnp.float32, -bound, bound)  # PyTorch layout
    bias = jax.random.uniform(k_b, (nA,), jnp.float32, -bound, bound)
    state = jax.random.normal(k_x, (B, nS), jnp.float32)

    # One-time parameter prep: padding + transpose happen once, not per call.
    w_pad, b_pad, nA_out = prepare_walkroom_params(weight, bias)

    out = walkroom_forward(state, w_pad, b_pad, nA_out)
    out = jax.block_until_ready(out)

    # Reference check in plain JAX.
    ref = jax.nn.sigmoid(state @ weight.T + bias)
    assert out.shape == (B, nA)
    assert jnp.allclose(out, ref, atol=1e-5, rtol=1e-5)

    print("KERNEL_OK")
</pallas_src>

<mosaic_0001>
module attributes {stable_mosaic.version = 11 : i64} {
  func.func @_walkroom_kernel(%arg0: i32, %arg1: memref<8x32xf32, #tpu.memory_space<vmem>>, %arg2: memref<32x128xf32, #tpu.memory_space<vmem>>, %arg3: memref<1x128xf32, #tpu.memory_space<vmem>>, %arg4: memref<8x128xf32, #tpu.memory_space<vmem>>) attributes {dimension_semantics = [#tpu.dimension_semantics<parallel>], iteration_bounds = array<i64: 1>, scalar_prefetch = 0 : i64, scratch_operands = 0 : i64, tpu.core_type = #tpu.core_type<tc>, window_params = [{transform_indices = @transform_0, window_bounds = array<i64: 8, 32>}, {pipeline_mode = #tpu.pipeline_mode<synchronous>, transform_indices = @transform_1, window_bounds = array<i64: 32, 128>}, {pipeline_mode = #tpu.pipeline_mode<synchronous>, transform_indices = @transform_2, window_bounds = array<i64: 1, 128>}, {transform_indices = @transform_3, window_bounds = array<i64: 8, 128>}]} {
    %c0 = arith.constant 0 : index
    %c0_0 = arith.constant 0 : index
    %0 = vector.load %arg1[%c0, %c0_0] : memref<8x32xf32, #tpu.memory_space<vmem>>, vector<8x32xf32>
    %c0_1 = arith.constant 0 : index
    %c0_2 = arith.constant 0 : index
    %1 = vector.load %arg2[%c0_1, %c0_2] : memref<32x128xf32, #tpu.memory_space<vmem>>, vector<32x128xf32>
    %cst = arith.constant dense<0.000000e+00> : vector<8x128xf32>
    %2 = tpu.matmul %0, %1, %cst {dimension_numbers = #tpu.dot_dimension_numbers<[1], [0], [0], [1], [0, 0, 1, 1], [], []>} : vector<8x32xf32>, vector<32x128xf32>, vector<8x128xf32> -> vector<8x128xf32>
    %c0_3 = arith.constant 0 : index
    %c0_4 = arith.constant 0 : index
    %3 = vector.load %arg3[%c0_3, %c0_4] : memref<1x128xf32, #tpu.memory_space<vmem>>, vector<1x128xf32>
    %4 = vector.broadcast %3 : vector<1x128xf32> to vector<8x128xf32>
    %5 = arith.addf %2, %4 : vector<8x128xf32>
    %6 = arith.negf %5 : vector<8x128xf32>
    %7 = math.exp %6 : vector<8x128xf32>
    %cst_5 = arith.constant 1.000000e+00 : f32
    %8 = vector.broadcast %cst_5 : f32 to vector<8x128xf32>
    %9 = arith.addf %8, %7 : vector<8x128xf32>
    %10 = arith.divf %8, %9 : vector<8x128xf32>
    %c0_6 = arith.constant 0 : index
    %c0_7 = arith.constant 0 : index
    %11 = vector.load %arg4[%c0_6, %c0_7] : memref<8x128xf32, #tpu.memory_space<vmem>>, vector<8x128xf32>
    tpu.vector_store %arg4[%c0_6, %c0_7], %10 {strides = array<i32>} : memref<8x128xf32, #tpu.memory_space<vmem>>, vector<8x128xf32>,
    return
  }
  func.func @transform_0(%arg0: i32) -> (i32, i32) {
    %c0_i32 = arith.constant 0 : i32
    %c0_i32_0 = arith.constant 0 : i32
    return %arg0, %c0_i32 : i32, i32
  }
  func.func @transform_1(%arg0: i32) -> (i32, i32) {
    %c0_i32 = arith.constant 0 : i32
    %c0_i32_0 = arith.constant 0 : i32
    %c0_i32_1 = arith.constant 0 : i32
    return %c0_i32, %c0_i32_0 : i32, i32
  }
  func.func @transform_2(%arg0: i32) -> (i32, i32) {
    %c0_i32 = arith.constant 0 : i32
    %c0_i32_0 = arith.constant 0 : i32
    %c0_i32_1 = arith.constant 0 : i32
    return %c0_i32, %c0_i32_0 : i32, i32
  }
  func.func @transform_3(%arg0: i32) -> (i32, i32) {
    %c0_i32 = arith.constant 0 : i32
    %c0_i32_0 = arith.constant 0 : i32
    return %arg0, %c0_i32 : i32, i32
  }
}

</mosaic_0001>

<bundles_post_ra>
// kernel: tpu_custom_call.1
= control target key start
LH: loop header
LB: loop body
LE: loop exit
PB: predicated region body
PF: predicated region fallthrough
CT: control target
= control target key end

     0   :  { %8 = vsyncpa [#allocation3], 0  ;;  %s243_s0 = inlined_call_operand.hbm [shape: f32[8,32], index: 0, kind: input, shape index: {}]   ;;  %s244_s1 = inlined_call_operand.hbm [shape: f32[32,128], index: 1, kind: input, shape index: {}]   ;;  %s245_s2 = inlined_call_operand.vmem [shape: f32[1,128], index: 2, kind: input, shape index: {}]   ;;  %s246_s3 = inlined_call_operand.hbm [shape: f32[8,128], index: 3, kind: output, shape index: {}]  }
   0x1   :  { %9 = vsyncpa [#allocation6], 0 }
   0x2   :  { %10 = vsyncpa [#allocation4], 0  ;;  %s16_s14 = sshll.u32 %s243_s0, 4  ;;  %s206_s15 = smov [#allocation2]   ;;  %s17_s14 = int_to_ptr.hbm [resolvable:$true] %s16_s14 }
   0x3   :  { %s18_s16 = sshll.u32 %s206_s15, 4  ;;  %s26_s19 = sshll.u32 %s244_s1, 4  ;;  %s19_s16 = int_to_ptr.vmem [resolvable:$true] %s18_s16  ;;  %s27_s19 = int_to_ptr.hbm [resolvable:$true] %s26_s19 }
   0x4   :  { %21 = dma.hbm_to_vmem [thread:$0]  %s17_s14, 128, %s19_s16, [#allocation3]  }
   0x5   :  { %s207_s20 = smov [#allocation5]   ;;  %s208_s22 = smov 128  }
   0x6   :  { %s28_s21 = sshll.u32 %s207_s20, 4  ;;  %s209_s23 = smov 8   ;;  %s29_s21 = int_to_ptr.vmem [resolvable:$true] %s28_s21 }
   0x7   :  { %34 = dma.hbm_to_vmem [thread:$0]  %s27_s19, 512, %s29_s21, [#allocation6], %s208_s22, %s208_s22, %s209_s23  }
   0x8   :  { %200 = dma.done.wait [#allocation3], 128  }
   0x9   :  { %201 = vsyncadd [#allocation3], 4294967168 }
   0xa   :  { %202 = dma.done.wait [#allocation6], 512  }
   0xb   :  { %203 = vsyncadd [#allocation6], 4294966784  ;;  %v49_v0 = vld [vmem:[#allocation5 + $0x18] sm:$0xff]  ;;  %v48_v1 = vld [vmem:[#allocation5 + $0x10] sm:$0xff]  ;;  %vm54_vm0 = vcmask 261120   ;;  %s210_s24 = smov [#allocation7]  }
   0xc   :  { %70 = vmatpush.msra.mxu0 %v49_v0  ;;  %v47_v2 = vld [vmem:[#allocation5 + $0x8] sm:$0xff]  ;;  %v46_v3 = vld [vmem:[#allocation5] sm:$0xff]  ;;  %v45_v4 = vld [vmem:[#allocation2] sm:$0xff]  ;;  %s103_s25 = sshll.u32 %s210_s24, 4  ;;  %s104_s25 = int_to_ptr.vmem [resolvable:$true] %s103_s25 }
   0xd   :  { %v123_v5 = vld [vmem:[%s245_s2] ss:$0 sm:$0xff]  ;;  %s105_s2 = sshll.u32 %s246_s3, 4  ;;  %s106_s2 = int_to_ptr.hbm [resolvable:$true] %s105_s2 }
   0xe   :  { %71 = vmatpush.msra.mxu0 %v48_v1 }
  0x10   :  { %72 = vmatpush.msra.mxu0 %v47_v2 }
  0x12   :  { %73 = vmatpush.msra.mxu0 %v46_v3 }
  0x13   :  { %116 = vmatmul.msk.f32.vlgmr.msra.gmra.mxu0 %vm54_vm0, %v45_v4 }
  0x90   :  { %v75_v6 = vpop.f32.mrf.mxu0 }
  0x91   :  { %v76_v7 = vadd.f32 %v123_v5, %v75_v6 }
  0x93   :  { %v117_v8 = vmul.f32 -1.442695, %v76_v7 }
  0x95   :  { %124 = vpow2.f32 %v117_v8 }
  0x9b   :  { %v125_v9 = vpop.eup %124 }
  0x9c   :  { %v81_v10 = vadd.f32 1.0, %v125_v9 }
  0x9e   :  { %126 = vrcp.f32 %v81_v10  ;;  %v93_v14 = vand.u32 2147483648, %v81_v10  ;;  %v91_v16 = vand.u32 2147483647, %v81_v10  ;;  %vm87_vm2 = vweird.f32 %v81_v10 }
  0xa0   :  { %v94_v18 = vor.u32 1.1754944e-38, %v93_v14  ;;  %vm92_vm4 = vcmp.eq.f32.partialorder %v91_v16, 8.507059e+37 }
  0xa4   :  { %v127_v11 = vpop.eup %126 }
  0xa5   :  { %v83_v12 = vmul.f32 %v127_v11, %v81_v10  ;;  %vm88_vm1 = vweird.f32 %v127_v11 }
  0xa6   :  { %vm89_vm3 = vmor %vm87_vm2, %vm88_vm1 }
  0xa7   :  { %v84_v13 = vsub.f32 1.0, %v83_v12 }
  0xa9   :  { %v85_v15 = vmul.f32 %v127_v11, %v84_v13 }
  0xab   :  { %v86_v17 = vadd.f32 %v127_v11, %v85_v15 }
  0xad   :  { %v90_v19 = vsel %vm89_vm3, %v127_v11, %v86_v17 }
  0xae   :  { %v95_v20 = vsel %vm92_vm4, %v94_v18, %v90_v19 }
  0xaf   :  { %97 = vst [vmem:[#allocation7] sm:$0xff] %v95_v20 }
  0xb0   :  { %108 = dma.vmem_to_hbm [thread:$0]  %s104_s25, 128, %s106_s2, [#allocation4]  }
  0xb1   :  { %204 = dma.done.wait [#allocation4], 128  }
  0xb2   :  { %205 = vsyncadd [#allocation4], 4294967168 }
  0xb3   :  { %113 = vsyncpa [#allocation3], 1 }
  0xb4   :  { %114 = vsyncpa [#allocation6], 1 }
  0xb5   :  { %115 = vsyncpa [#allocation4], 1 }

</bundles_post_ra>
